<compile_context>
chip_gen: v7x
topology: tpu7x:2x2x1
jax: 0.10.0
libtpu: 0.0.40
codegen_flags: <defaults>
</compile_context>

<pallas_src>
import functools

import jax
import jax.numpy as jnp
from jax.experimental import pallas as pl
from jax.experimental.pallas import tpu as pltpu


def _variance_predictor_kernel(x_ref, w_conv_ref, b_conv_ref, g_ln_ref, b_ln_ref,
                               w_lin_ref, b_lin_ref, out_ref, buf_ref,
                               *, kernel_size, n_layers, eps):
    T = x_ref.shape[1]
    F = buf_ref.shape[1]
    K = kernel_size
    P = (K - 1) // 2

    # Zero only the P padding rows at top/bottom of the conv staging buffer
    # (re-done every grid step so megacore/parallel-B sharding stays correct).
    if P > 0:
        buf_ref[:P, :] = jnp.zeros((P, F), jnp.float32)
        buf_ref[P + T:, :] = jnp.zeros((P, F), jnp.float32)

    # The current activation lives directly in the interior rows of the padded
    # staging buffer -> no separate activation scratch, no per-layer copy.
    buf_ref[P:P + T, :] = x_ref[0]                                   # (T, F) f32

    for i in range(n_layers):
        # im2col: concat the K time-shifted slices along lanes -> one deep matmul.
        cols = jnp.concatenate(
            [buf_ref[k:k + T, :] for k in range(K)], axis=-1)        # (T, K*F) f32
        acc = jnp.dot(cols.astype(jnp.bfloat16), w_conv_ref[i],
                      preferred_element_type=jnp.float32)            # (T, F) f32
        acc = acc + b_conv_ref[i:i + 1, :]

        # ReLU
        a = jnp.maximum(acc, 0.0)

        # LayerNorm over the channel (lane) axis, f32.
        mean = jnp.mean(a, axis=-1, keepdims=True)
        var = jnp.mean(jnp.square(a - mean), axis=-1, keepdims=True)
        a = (a - mean) * jax.lax.rsqrt(var + eps)
        buf_ref[P:P + T, :] = a * g_ln_ref[i:i + 1, :] + b_ln_ref[i:i + 1, :]

        # Dropout: eval-mode no-op (see TODO at top).

    # Final Linear(filter_size -> output_size), then the wrapper squeezes the last dim.
    out = (jnp.dot(buf_ref[P:P + T, :].astype(jnp.bfloat16), w_lin_ref[...],
                   preferred_element_type=jnp.float32) + b_lin_ref[...])
    out_ref[0] = out.astype(out_ref.dtype)


def variance_predictor(x, params, *, kernel_size, n_layers):
    """x: (B, T, input_size) float32 -> (B, T) float32 (output_size == 1 squeezed)."""
    B, T, Cin = x.shape
    F = params["b_conv"].shape[1]
    O = params["w_lin"].shape[1]
    K = kernel_size
    P = (K - 1) // 2

    # Pad input channels to filter_size (matching zero weight columns were added in init).
    if Cin < F:
        x = jnp.pad(x, ((0, 0), (0, 0), (0, F - Cin)))

    kernel = functools.partial(
        _variance_predictor_kernel,
        kernel_size=kernel_size,
        n_layers=n_layers,
        eps=1e-5,
    )

    out = pl.pallas_call(
        kernel,
        out_shape=jax.ShapeDtypeStruct((B, T, O), jnp.float32),
        grid_spec=pltpu.PrefetchScalarGridSpec(
            num_scalar_prefetch=0,
            grid=(B,),
            in_specs=[
                pl.BlockSpec((1, T, F), lambda b: (b, 0, 0)),             # x (padded)
                pl.BlockSpec((n_layers, K * F, F), lambda b: (0, 0, 0)),  # w_conv (bf16)
                pl.BlockSpec((n_layers, F), lambda b: (0, 0)),            # b_conv
                pl.BlockSpec((n_layers, F), lambda b: (0, 0)),            # ln gamma
                pl.BlockSpec((n_layers, F), lambda b: (0, 0)),            # ln beta
                pl.BlockSpec((F, O), lambda b: (0, 0)),                   # w_lin (bf16)
                pl.BlockSpec((1, O), lambda b: (0, 0)),                   # b_lin
            ],
            out_specs=pl.BlockSpec((1, T, O), lambda b: (b, 0, 0)),
            scratch_shapes=[
                pltpu.VMEM((T + 2 * P, F), jnp.float32),                  # padded conv/act buffer
            ],
        ),
        compiler_params=pltpu.CompilerParams(
            dimension_semantics=("parallel",),
            vmem_limit_bytes=32 * 1024 * 1024,
        ),
    )(x, params["w_conv"], params["b_conv"], params["g_ln"], params["b_ln"],
      params["w_lin"], params["b_lin"])
    return out[..., 0]


def variance_predictor_ref(x, params, *, kernel_size, n_layers):
    """Pure-JAX reference with the same converted params / bf16 matmul casts."""
    B, T, Cin = x.shape
    F = params["b_conv"].shape[1]
    K = kernel_size
    P = (K - 1) // 2
    h = jnp.pad(x, ((0, 0), (0, 0), (0, F - Cin))) if Cin < F else x
    for i in range(n_layers):
        hp = jnp.pad(h, ((0, 0), (P, P), (0, 0)))
        cols = jnp.concatenate([hp[:, k:k + T, :] for k in range(K)], axis=-1)
        acc = jnp.einsum("btk,kf->btf", cols.astype(jnp.bfloat16),
                         params["w_conv"][i],
                         preferred_element_type=jnp.float32) + params["b_conv"][i][None, None]
        a = jnp.maximum(acc, 0.0)
        mean = jnp.mean(a, -1, keepdims=True)
        var = jnp.mean(jnp.square(a - mean), -1, keepdims=True)
        a = (a - mean) * jax.lax.rsqrt(var + 1e-5)
        h = a * params["g_ln"][i][None, None] + params["b_ln"][i][None, None]
    out = jnp.einsum("btf,fo->bto", h.astype(jnp.bfloat16), params["w_lin"],
                     preferred_element_type=jnp.float32) + params["b_lin"][None]
    return out[..., 0]


def init_params(key, input_size, filter_size, kernel_size, n_layers, output_size=1):
    """Deterministic synthetic init in torch shapes, converted to matmul-friendly
    layouts. ConvNorm == Conv1d with 'same' padding (standard FastSpeech2 ConvNorm);
    its xavier init is just a different scale, so plain gaussians reproduce the
    forward semantics. Matmul weights are stored bf16 (f32 accumulation in-kernel)."""
    F, K = filter_size, kernel_size
    scale = 0.1
    keys = jax.random.split(key, 2 * n_layers + 2)

    w_conv_list, b_conv_list, g_ln_list, b_ln_list = [], [], [], []
    for i in range(n_layers):
        cin = input_size if i == 0 else F
        kw, kb = jax.random.split(keys[i])
        w = scale * jax.random.normal(kw, (F, cin, K), jnp.float32)   # torch (out, in, K)
        b = scale * jax.random.normal(kb, (F,), jnp.float32)
        wt = jnp.transpose(w, (2, 1, 0))                              # (K, cin, F)
        if cin < F:
            wt = jnp.pad(wt, ((0, 0), (0, F - cin), (0, 0)))          # zero cols for padded Cin
        w_conv_list.append(wt.reshape(K * F, F))
        b_conv_list.append(b)

        kg, kbeta = jax.random.split(keys[n_layers + i])
        g_ln_list.append(1.0 + 0.1 * jax.random.normal(kg, (F,), jnp.float32))
        b_ln_list.append(0.1 * jax.random.normal(kbeta, (F,), jnp.float32))

    kl1, kl2 = jax.random.split(keys[-1])
    w_lin = scale * jax.random.normal(kl1, (output_size, F), jnp.float32)  # torch (out, in)
    b_lin = scale * jax.random.normal(kl2, (output_size,), jnp.float32)

    return dict(
        w_conv=jnp.stack(w_conv_list, 0).astype(jnp.bfloat16),        # (L, K*F, F) bf16
        b_conv=jnp.stack(b_conv_list, 0),                              # (L, F) f32
        g_ln=jnp.stack(g_ln_list, 0),                                  # (L, F) f32
        b_ln=jnp.stack(b_ln_list, 0),                                  # (L, F) f32
        w_lin=jnp.transpose(w_lin, (1, 0)).astype(jnp.bfloat16),       # (F, O) bf16
        b_lin=b_lin[None, :],                                          # (1, O) f32
    )


if __name__ == "__main__":
    B, T = 2, 16
    input_size = 8
    filter_size = 32
    kernel_size = 3
    n_layers = 2
    output_size = 1

    key = jax.random.PRNGKey(0)
    k_x, k_p = jax.random.split(key)

    # PyTorch input would be x: (B, T, input_size); same layout here.
    x = jax.random.normal(k_x, (B, T, input_size), jnp.float32)
    params = init_params(k_p, input_size, filter_size, kernel_size, n_layers, output_size)

    out = variance_predictor(x, params, kernel_size=kernel_size, n_layers=n_layers)
    out = jax.block_until_ready(out)

    ref = variance_predictor_ref(x, params, kernel_size=kernel_size, n_layers=n_layers)

    assert out.shape == (B, T), out.shape
    max_err = float(jnp.max(jnp.abs(out - ref)))
    assert max_err < 2e-3, f"max abs error {max_err}"
    print("KERNEL_OK")
</pallas_src>

<mosaic_0001>
module attributes {stable_mosaic.version = 11 : i64} {
  func.func @_variance_predictor_kernel(%arg0: i32, %arg1: memref<1x16x32xf32, #tpu.memory_space<vmem>>, %arg2: memref<2x96x32xbf16, #tpu.memory_space<vmem>>, %arg3: memref<2x32xf32, #tpu.memory_space<vmem>>, %arg4: memref<2x32xf32, #tpu.memory_space<vmem>>, %arg5: memref<2x32xf32, #tpu.memory_space<vmem>>, %arg6: memref<32x1xbf16, #tpu.memory_space<vmem>>, %arg7: memref<1x1xf32, #tpu.memory_space<vmem>>, %arg8: memref<1x16x1xf32, #tpu.memory_space<vmem>>, %arg9: memref<18x32xf32, #tpu.memory_space<vmem>>) attributes {dimension_semantics = [#tpu.dimension_semantics<parallel>], iteration_bounds = array<i64: 2>, scalar_prefetch = 0 : i64, scratch_operands = 1 : i64, tpu.core_type = #tpu.core_type<tc>, window_params = [{transform_indices = @transform_0, window_bounds = array<i64: 1, 16, 32>}, {pipeline_mode = #tpu.pipeline_mode<synchronous>, transform_indices = @transform_1, window_bounds = array<i64: 2, 96, 32>}, {pipeline_mode = #tpu.pipeline_mode<synchronous>, transform_indices = @transform_2, window_bounds = array<i64: 2, 32>}, {pipeline_mode = #tpu.pipeline_mode<synchronous>, transform_indices = @transform_3, window_bounds = array<i64: 2, 32>}, {pipeline_mode = #tpu.pipeline_mode<synchronous>, transform_indices = @transform_4, window_bounds = array<i64: 2, 32>}, {pipeline_mode = #tpu.pipeline_mode<synchronous>, transform_indices = @transform_5, window_bounds = array<i64: 32, 1>}, {pipeline_mode = #tpu.pipeline_mode<synchronous>, transform_indices = @transform_6, window_bounds = array<i64: 1, 1>}, {transform_indices = @transform_7, window_bounds = array<i64: 1, 16, 1>}]} {
    %cst = arith.constant 0.000000e+00 : f32
    %0 = vector.broadcast %cst : f32 to vector<1x32xf32>
    %c0 = arith.constant 0 : index
    %c0_0 = arith.constant 0 : index
    %1 = vector.load %arg9[%c0, %c0_0] : memref<18x32xf32, #tpu.memory_space<vmem>>, vector<1x32xf32>
    tpu.vector_store %arg9[%c0, %c0_0], %0 {strides = array<i32>} : memref<18x32xf32, #tpu.memory_space<vmem>>, vector<1x32xf32>,
    %cst_1 = arith.constant 0.000000e+00 : f32
    %2 = vector.broadcast %cst_1 : f32 to vector<1x32xf32>
    %c17 = arith.constant 17 : index
    %c0_2 = arith.constant 0 : index
    %3 = vector.load %arg9[%c17, %c0_2] : memref<18x32xf32, #tpu.memory_space<vmem>>, vector<1x32xf32>
    tpu.vector_store %arg9[%c17, %c0_2], %2 {strides = array<i32>} : memref<18x32xf32, #tpu.memory_space<vmem>>, vector<1x32xf32>,
    %c0_3 = arith.constant 0 : index
    %c0_4 = arith.constant 0 : index
    %c0_5 = arith.constant 0 : index
    %4 = vector.load %arg1[%c0_3, %c0_4, %c0_5] : memref<1x16x32xf32, #tpu.memory_space<vmem>>, vector<1x16x32xf32>
    %5 = vector.shape_cast %4 : vector<1x16x32xf32> to vector<16x32xf32>
    %c1 = arith.constant 1 : index
    %c0_6 = arith.constant 0 : index
    %6 = vector.load %arg9[%c1, %c0_6] : memref<18x32xf32, #tpu.memory_space<vmem>>, vector<16x32xf32>
    tpu.vector_store %arg9[%c1, %c0_6], %5 {strides = array<i32>} : memref<18x32xf32, #tpu.memory_space<vmem>>, vector<16x32xf32>,
    %c0_7 = arith.constant 0 : index
    %c0_8 = arith.constant 0 : index
    %7 = vector.load %arg9[%c0_7, %c0_8] : memref<18x32xf32, #tpu.memory_space<vmem>>, vector<16x32xf32>
    %c1_9 = arith.constant 1 : index
    %c0_10 = arith.constant 0 : index
    %8 = vector.load %arg9[%c1_9, %c0_10] : memref<18x32xf32, #tpu.memory_space<vmem>>, vector<16x32xf32>
    %c2 = arith.constant 2 : index
    %c0_11 = arith.constant 0 : index
    %9 = vector.load %arg9[%c2, %c0_11] : memref<18x32xf32, #tpu.memory_space<vmem>>, vector<16x32xf32>
    %10 = tpu.concatenate %7, %8, %9 in 1 : vector<16x32xf32>, vector<16x32xf32>, vector<16x32xf32> -> vector<16x96xf32>
    %11 = arith.truncf %10 : vector<16x96xf32> to vector<16x96xbf16>
    %c0_12 = arith.constant 0 : index
    %c0_13 = arith.constant 0 : index
    %c0_14 = arith.constant 0 : index
    %12 = vector.load %arg2[%c0_12, %c0_13, %c0_14] : memref<2x96x32xbf16, #tpu.memory_space<vmem>>, vector<1x96x32xbf16>
    %13 = vector.shape_cast %12 : vector<1x96x32xbf16> to vector<96x32xbf16>
    %cst_15 = arith.constant dense<0.000000e+00> : vector<16x32xf32>
    %14 = tpu.matmul %11, %13, %cst_15 {dimension_numbers = #tpu.dot_dimension_numbers<[1], [0], [0], [1], [0, 0, 1, 1], [], []>} : vector<16x96xbf16>, vector<96x32xbf16>, vector<16x32xf32> -> vector<16x32xf32>
    %c0_16 = arith.constant 0 : index
    %c0_17 = arith.constant 0 : index
    %15 = vector.load %arg3[%c0_16, %c0_17] : memref<2x32xf32, #tpu.memory_space<vmem>>, vector<1x32xf32>
    %16 = vector.broadcast %15 : vector<1x32xf32> to vector<16x32xf32>
    %17 = arith.addf %14, %16 : vector<16x32xf32>
    %cst_18 = arith.constant 0.000000e+00 : f32
    %18 = vector.broadcast %cst_18 : f32 to vector<16x32xf32>
    %19 = arith.maximumf %17, %18 : vector<16x32xf32>
    %cst_19 = arith.constant dense<0.000000e+00> : vector<16xf32>
    %20 = vector.multi_reduction <add>, %19, %cst_19 [1] : vector<16x32xf32> to vector<16xf32>
    %21 = vector.shape_cast %20 : vector<16xf32> to vector<16x1xf32>
    %cst_20 = arith.constant 3.200000e+01 : f32
    %22 = vector.broadcast %cst_20 : f32 to vector<16x1xf32>
    %23 = arith.divf %21, %22 : vector<16x1xf32>
    %24 = vector.broadcast %23 : vector<16x1xf32> to vector<16x32xf32>
    %25 = arith.subf %19, %24 : vector<16x32xf32>
    %26 = arith.mulf %25, %25 : vector<16x32xf32>
    %cst_21 = arith.constant dense<0.000000e+00> : vector<16xf32>
    %27 = vector.multi_reduction <add>, %26, %cst_21 [1] : vector<16x32xf32> to vector<16xf32>
    %28 = vector.shape_cast %27 : vector<16xf32> to vector<16x1xf32>
    %cst_22 = arith.constant 3.200000e+01 : f32
    %29 = vector.broadcast %cst_22 : f32 to vector<16x1xf32>
    %30 = arith.divf %28, %29 : vector<16x1xf32>
    %31 = vector.broadcast %23 : vector<16x1xf32> to vector<16x32xf32>
    %32 = arith.subf %19, %31 : vector<16x32xf32>
    %cst_23 = arith.constant 9.99999974E-6 : f32
    %33 = vector.broadcast %cst_23 : f32 to vector<16x1xf32>
    %34 = arith.addf %30, %33 : vector<16x1xf32>
    %35 = math.rsqrt %34 : vector<16x1xf32>
    %36 = vector.broadcast %35 : vector<16x1xf32> to vector<16x32xf32>
    %37 = arith.mulf %32, %36 : vector<16x32xf32>
    %c0_24 = arith.constant 0 : index
    %c0_25 = arith.constant 0 : index
    %38 = vector.load %arg4[%c0_24, %c0_25] : memref<2x32xf32, #tpu.memory_space<vmem>>, vector<1x32xf32>
    %39 = vector.broadcast %38 : vector<1x32xf32> to vector<16x32xf32>
    %40 = arith.mulf %37, %39 : vector<16x32xf32>
    %c0_26 = arith.constant 0 : index
    %c0_27 = arith.constant 0 : index
    %41 = vector.load %arg5[%c0_26, %c0_27] : memref<2x32xf32, #tpu.memory_space<vmem>>, vector<1x32xf32>
    %42 = vector.broadcast %41 : vector<1x32xf32> to vector<16x32xf32>
    %43 = arith.addf %40, %42 : vector<16x32xf32>
    %c1_28 = arith.constant 1 : index
    %c0_29 = arith.constant 0 : index
    %44 = vector.load %arg9[%c1_28, %c0_29] : memref<18x32xf32, #tpu.memory_space<vmem>>, vector<16x32xf32>
    tpu.vector_store %arg9[%c1_28, %c0_29], %43 {strides = array<i32>} : memref<18x32xf32, #tpu.memory_space<vmem>>, vector<16x32xf32>,
    %c0_30 = arith.constant 0 : index
    %c0_31 = arith.constant 0 : index
    %45 = vector.load %arg9[%c0_30, %c0_31] : memref<18x32xf32, #tpu.memory_space<vmem>>, vector<16x32xf32>
    %c1_32 = arith.constant 1 : index
    %c0_33 = arith.constant 0 : index
    %46 = vector.load %arg9[%c1_32, %c0_33] : memref<18x32xf32, #tpu.memory_space<vmem>>, vector<16x32xf32>
    %c2_34 = arith.constant 2 : index
    %c0_35 = arith.constant 0 : index
    %47 = vector.load %arg9[%c2_34, %c0_35] : memref<18x32xf32, #tpu.memory_space<vmem>>, vector<16x32xf32>
    %48 = tpu.concatenate %45, %46, %47 in 1 : vector<16x32xf32>, vector<16x32xf32>, vector<16x32xf32> -> vector<16x96xf32>
    %49 = arith.truncf %48 : vector<16x96xf32> to vector<16x96xbf16>
    %c1_36 = arith.constant 1 : index
    %c0_37 = arith.constant 0 : index
    %c0_38 = arith.constant 0 : index
    %50 = vector.load %arg2[%c1_36, %c0_37, %c0_38] : memref<2x96x32xbf16, #tpu.memory_space<vmem>>, vector<1x96x32xbf16>
    %51 = vector.shape_cast %50 : vector<1x96x32xbf16> to vector<96x32xbf16>
    %cst_39 = arith.constant dense<0.000000e+00> : vector<16x32xf32>
    %52 = tpu.matmul %49, %51, %cst_39 {dimension_numbers = #tpu.dot_dimension_numbers<[1], [0], [0], [1], [0, 0, 1, 1], [], []>} : vector<16x96xbf16>, vector<96x32xbf16>, vector<16x32xf32> -> vector<16x32xf32>
    %c1_40 = arith.constant 1 : index
    %c0_41 = arith.constant 0 : index
    %53 = vector.load %arg3[%c1_40, %c0_41] : memref<2x32xf32, #tpu.memory_space<vmem>>, vector<1x32xf32>
    %54 = vector.broadcast %53 : vector<1x32xf32> to vector<16x32xf32>
    %55 = arith.addf %52, %54 : vector<16x32xf32>
    %cst_42 = arith.constant 0.000000e+00 : f32
    %56 = vector.broadcast %cst_42 : f32 to vector<16x32xf32>
    %57 = arith.maximumf %55, %56 : vector<16x32xf32>
    %cst_43 = arith.constant dense<0.000000e+00> : vector<16xf32>
    %58 = vector.multi_reduction <add>, %57, %cst_43 [1] : vector<16x32xf32> to vector<16xf32>
    %59 = vector.shape_cast %58 : vector<16xf32> to vector<16x1xf32>
    %cst_44 = arith.constant 3.200000e+01 : f32
    %60 = vector.broadcast %cst_44 : f32 to vector<16x1xf32>
    %61 = arith.divf %59, %60 : vector<16x1xf32>
    %62 = vector.broadcast %61 : vector<16x1xf32> to vector<16x32xf32>
    %63 = arith.subf %57, %62 : vector<16x32xf32>
    %64 = arith.mulf %63, %63 : vector<16x32xf32>
    %cst_45 = arith.constant dense<0.000000e+00> : vector<16xf32>
    %65 = vector.multi_reduction <add>, %64, %cst_45 [1] : vector<16x32xf32> to vector<16xf32>
    %66 = vector.shape_cast %65 : vector<16xf32> to vector<16x1xf32>
    %cst_46 = arith.constant 3.200000e+01 : f32
    %67 = vector.broadcast %cst_46 : f32 to vector<16x1xf32>
    %68 = arith.divf %66, %67 : vector<16x1xf32>
    %69 = vector.broadcast %61 : vector<16x1xf32> to vector<16x32xf32>
    %70 = arith.subf %57, %69 : vector<16x32xf32>
    %cst_47 = arith.constant 9.99999974E-6 : f32
    %71 = vector.broadcast %cst_47 : f32 to vector<16x1xf32>
    %72 = arith.addf %68, %71 : vector<16x1xf32>
    %73 = math.rsqrt %72 : vector<16x1xf32>
    %74 = vector.broadcast %73 : vector<16x1xf32> to vector<16x32xf32>
    %75 = arith.mulf %70, %74 : vector<16x32xf32>
    %c1_48 = arith.constant 1 : index
    %c0_49 = arith.constant 0 : index
    %76 = vector.load %arg4[%c1_48, %c0_49] : memref<2x32xf32, #tpu.memory_space<vmem>>, vector<1x32xf32>
    %77 = vector.broadcast %76 : vector<1x32xf32> to vector<16x32xf32>
    %78 = arith.mulf %75, %77 : vector<16x32xf32>
    %c1_50 = arith.constant 1 : index
    %c0_51 = arith.constant 0 : index
    %79 = vector.load %arg5[%c1_50, %c0_51] : memref<2x32xf32, #tpu.memory_space<vmem>>, vector<1x32xf32>
    %80 = vector.broadcast %79 : vector<1x32xf32> to vector<16x32xf32>
    %81 = arith.addf %78, %80 : vector<16x32xf32>
    %c1_52 = arith.constant 1 : index
    %c0_53 = arith.constant 0 : index
    %82 = vector.load %arg9[%c1_52, %c0_53] : memref<18x32xf32, #tpu.memory_space<vmem>>, vector<16x32xf32>
    tpu.vector_store %arg9[%c1_52, %c0_53], %81 {strides = array<i32>} : memref<18x32xf32, #tpu.memory_space<vmem>>, vector<16x32xf32>,
    %c1_54 = arith.constant 1 : index
    %c0_55 = arith.constant 0 : index
    %83 = vector.load %arg9[%c1_54, %c0_55] : memref<18x32xf32, #tpu.memory_space<vmem>>, vector<16x32xf32>
    %84 = arith.truncf %83 : vector<16x32xf32> to vector<16x32xbf16>
    %c0_56 = arith.constant 0 : index
    %c0_57 = arith.constant 0 : index
    %85 = vector.load %arg6[%c0_56, %c0_57] : memref<32x1xbf16, #tpu.memory_space<vmem>>, vector<32x1xbf16>
    %cst_58 = arith.constant dense<0.000000e+00> : vector<16x1xf32>
    %86 = tpu.matmul %84, %85, %cst_58 {dimension_numbers = #tpu.dot_dimension_numbers<[1], [0], [0], [1], [0, 0, 1, 1], [], []>} : vector<16x32xbf16>, vector<32x1xbf16>, vector<16x1xf32> -> vector<16x1xf32>
    %c0_59 = arith.constant 0 : index
    %c0_60 = arith.constant 0 : index
    %87 = vector.load %arg7[%c0_59, %c0_60] : memref<1x1xf32, #tpu.memory_space<vmem>>, vector<1x1xf32>
    %88 = vector.broadcast %87 : vector<1x1xf32> to vector<16x1xf32>
    %89 = arith.addf %86, %88 : vector<16x1xf32>
    %c0_61 = arith.constant 0 : index
    %c0_62 = arith.constant 0 : index
    %c0_63 = arith.constant 0 : index
    %90 = vector.load %arg8[%c0_61, %c0_62, %c0_63] : memref<1x16x1xf32, #tpu.memory_space<vmem>>, vector<1x16x1xf32>
    %91 = vector.shape_cast %90 : vector<1x16x1xf32> to vector<16x1xf32>
    %92 = vector.shape_cast %89 : vector<16x1xf32> to vector<1x16x1xf32>
    tpu.vector_store %arg8[%c0_61, %c0_62, %c0_63], %92 {strides = array<i32>} : memref<1x16x1xf32, #tpu.memory_space<vmem>>, vector<1x16x1xf32>,
    return
  }
  func.func @transform_0(%arg0: i32) -> (i32, i32, i32) {
    %c0_i32 = arith.constant 0 : i32
    %c0_i32_0 = arith.constant 0 : i32
    %c0_i32_1 = arith.constant 0 : i32
    return %arg0, %c0_i32, %c0_i32_0 : i32, i32, i32
  }
  func.func @transform_1(%arg0: i32) -> (i32, i32, i32) {
    %c0_i32 = arith.constant 0 : i32
    %c0_i32_0 = arith.constant 0 : i32
    %c0_i32_1 = arith.constant 0 : i32
    %c0_i32_2 = arith.constant 0 : i32
    return %c0_i32, %c0_i32_0, %c0_i32_1 : i32, i32, i32
  }
  func.func @transform_2(%arg0: i32) -> (i32, i32) {
    %c0_i32 = arith.constant 0 : i32
    %c0_i32_0 = arith.constant 0 : i32
    %c0_i32_1 = arith.constant 0 : i32
    return %c0_i32, %c0_i32_0 : i32, i32
  }
  func.func @transform_3(%arg0: i32) -> (i32, i32) {
    %c0_i32 = arith.constant 0 : i32
    %c0_i32_0 = arith.constant 0 : i32
    %c0_i32_1 = arith.constant 0 : i32
    return %c0_i32, %c0_i32_0 : i32, i32
  }
  func.func @transform_4(%arg0: i32) -> (i32, i32) {
    %c0_i32 = arith.constant 0 : i32
    %c0_i32_0 = arith.constant 0 : i32
    %c0_i32_1 = arith.constant 0 : i32
    return %c0_i32, %c0_i32_0 : i32, i32
  }
  func.func @transform_5(%arg0: i32) -> (i32, i32) {
    %c0_i32 = arith.constant 0 : i32
    %c0_i32_0 = arith.constant 0 : i32
    %c0_i32_1 = arith.constant 0 : i32
    return %c0_i32, %c0_i32_0 : i32, i32
  }
  func.func @transform_6(%arg0: i32) -> (i32, i32) {
    %c0_i32 = arith.constant 0 : i32
    %c0_i32_0 = arith.constant 0 : i32
    %c0_i32_1 = arith.constant 0 : i32
    return %c0_i32, %c0_i32_0 : i32, i32
  }
  func.func @transform_7(%arg0: i32) -> (i32, i32, i32) {
    %c0_i32 = arith.constant 0 : i32
    %c0_i32_0 = arith.constant 0 : i32
    %c0_i32_1 = arith.constant 0 : i32
    return %arg0, %c0_i32, %c0_i32_0 : i32, i32, i32
  }
}

</mosaic_0001>

<bundles_post_ra>
// kernel: tpu_custom_call.1
= control target key start
LH: loop header
LB: loop body
LE: loop exit
PB: predicated region body
PF: predicated region fallthrough
CT: control target
= control target key end

     0   :  { %s973_s26 = smov 0   ;;  %s1108_s0 = inlined_call_operand.vmem [shape: f32[2,16,32], index: 0, kind: input, shape index: {}]   ;;  %s1109_s1 = inlined_call_operand.vmem [shape: bf16[2,96,32], index: 1, kind: input, shape index: {}]   ;;  %s1110_s2 = inlined_call_operand.vmem [shape: f32[2,32], index: 2, kind: input, shape index: {}]   ;;  %s1111_s3 = inlined_call_operand.vmem [shape: f32[2,32], index: 3, kind: input, shape index: {}]   ;;  %s1112_s4 = inlined_call_operand.vmem [shape: f32[2,32], index: 4, kind: input, shape index: {}]   ;;  %s1113_s5 = inlined_call_operand.vmem [shape: bf16[32,1], index: 5, kind: input, shape index: {}]   ;;  %s1114_s6 = inlined_call_operand.<no memory space> [shape: f32[1,1], index: 6, kind: input, shape index: {}]   ;;  %s1115_s7 = inlined_call_operand.vmem [shape: f32[2,16,1], index: 7, kind: output, shape index: {}]  }
   0x1   :  { %v12_v0 = vstv %s1114_s6 }
   0x2   :  { %13 = vst [vmem:[#allocation3] sm:$0x1] %v12_v0 }
   0x3 LB: > { %s758_s27 = sadd.s32 4294967295, %s924_s26   ;;  %p762_p0 = scmp.ge.s32.totalorder %s924_s26, 1  ;;  %s924_s26 = sphi %s973_s26, %s19_s26  }
   0x4   : > { %p239_p1 = scmp.lt.s32.totalorder %s924_s26, 3 }
   0x6   : > { %p240_p2 = pnand %p762_p0, %p239_p1 }
   0x7   : > { %p271_p3 = scmp.lt.s32.totalorder (!%p240_p2), %s758_s27, 1  ;;  %vm282_vm0 = vcmask (!%p240_p2), 253952   ;;  %v896_v1 = vld [vmem:[%s1109_s1] sm:$0xff] (!%p240_p2)   ;;  %v926_v2 = vmov (!%p240_p2), 0.0   ;;  %v897_v3 = vld [vmem:[%s1109_s1 + $0x8] sm:$0xff] (!%p240_p2)   ;;  %vm287_vm1 = vcmask (!%p240_p2), 261120  }
   0x8   : > { %243 = sbr.rel (%p240_p2) target bundleno = 1580 (0x62c), region = 48  ;;  %283 = vst.msk [vmem:[#allocation2] sm:$0x1] (!%p240_p2), %vm282_vm0, %v926_v2  ;;  %284 = vst.msk [vmem:[#allocation2 + $0x11] sm:$0x1] (!%p240_p2), %vm282_vm0, %v926_v2  ;;  %824 = vmatprep.subr.bf16.mxu0 (!%p240_p2), %v926_v2  ;;  %840 = vmatprep.subr.bf16.mxu1 (!%p240_p2), %v926_v2  ;;  %v898_v4 = vld [vmem:[%s1109_s1 + $0x10] sm:$0xff] (!%p240_p2)  }
   0x9   : > { %825 = vmatpush3.bf16.msra.mxu0 (!%p240_p2), %v896_v1  ;;  %v899_v7 = vld [vmem:[%s1109_s1 + $0x18] sm:$0xff] (!%p240_p2)   ;;  %vm927_vm2 = vmmov (!%p240_p2), 0   ;;  %v900_v8 = vld [vmem:[%s1109_s1 + $0x20] sm:$0xff] (!%p240_p2)   ;;  %s928_s18 = smov (!%p240_p2), 32   ;;  %v901_v15 = vld [vmem:[%s1109_s1 + $0x28] sm:$0xff] (!%p240_p2)   ;;  %s929_s21 = smov (!%p240_p2), 64  }
   0xa   : > { %826 = vmatprep.subr.bf16.mxu0 (!%p240_p2), %v926_v2  ;;  %836 = vmatprep.mubr.msk.bf16.mxu0 (!%p240_p2), %vm927_vm2, %v926_v2  ;;  %vm314_vm3 = vcmask (!%p240_p2), 523264   ;;  %vm371_vm4 = vcmask (!%p240_p2), 785408   ;;  %v767_v29 = vld [vmem:[%s1110_s2] ss:$0 sm:$0xff] (!%p240_p2)  ;;  %v902_v50 = vld [vmem:[%s1109_s1 + $0x30] sm:$0xff] (!%p240_p2)   ;;  %v903_v51 = vld [vmem:[%s1109_s1 + $0x38] sm:$0xff] (!%p240_p2)  }
   0xb   : > { %852 = vmatprep.mubr.msk.bf16.mxu1 (!%p240_p2), %vm927_vm2, %v926_v2  ;;  %841 = vmatpush3.bf16.msra.mxu1 (!%p240_p2), %v902_v50  ;;  %v904_v52 = vld [vmem:[%s1109_s1 + $0x40] sm:$0xff] (!%p240_p2)   ;;  %v905_v53 = vld [vmem:[%s1109_s1 + $0x48] sm:$0xff] (!%p240_p2)   ;;  %vm700_vm5 = vcmask (!%p240_p2), 7168  }
   0xc   : > { %842 = vmatprep.subr.bf16.mxu1 (!%p240_p2), %v926_v2  ;;  %v775_v61 = vld [vmem:[%s1111_s3] ss:$0 sm:$0xff] (!%p240_p2)  ;;  %v909_v50 = vld [vmem:[%s1113_s5 + $0x8] sm:$0xff] (!%p240_p2)  }
   0xd   : > { %827 = vmatpush3.bf16.msra.mxu0 (!%p240_p2), %v897_v3  ;;  %v776_v63 = vld [vmem:[%s1112_s4] ss:$0 sm:$0xff] (!%p240_p2) }
   0xe   : > { %828 = vmatprep.subr.bf16.mxu0 (!%p240_p2), %v926_v2 }
   0xf   : > { %s1117_s27 = smov (!%p271_p3, %s758_s27), 1  ;;  %843 = vmatpush3.bf16.msra.mxu1 %v903_v51 }
  0x10   : > { %s805_s8 = sshll.u32 %s1117_s27, 4  ;;  %844 = vmatprep.subr.bf16.mxu1 %v926_v2 }
  0x11   : > { %s275_s11 = scalar_lea.vmem %s1108_s0, %s805_s8  ;;  %829 = vmatpush3.bf16.msra.mxu0 %v898_v4  ;;  %s280_s10 = scalar_lea.vmem %s1115_s7, %s805_s8 }
  0x12   : > { %v285_v5 = vld [vmem:[%s275_s11] sm:$0xff]  ;;  %v286_v6 = vld [vmem:[%s275_s11 + $0x8] sm:$0xff]  ;;  %830 = vmatprep.subr.bf16.mxu0 %v926_v2 }
  0x13   : > { %288 = vst.msk [vmem:[#allocation2 + $0x1] sm:$0xff] %vm287_vm1, %v285_v5  ;;  %289 = vst.msk [vmem:[#allocation2 + $0x9] sm:$0xff] %vm287_vm1, %v286_v6  ;;  %845 = vmatpush3.bf16.msra.mxu1 %v904_v52 }
  0x14   : > { %846 = vmatprep.subr.bf16.mxu1 %v926_v2 }
  0x15   : > { %831 = vmatpush3.bf16.msra.mxu0 %v899_v7  ;;  %v906_v7 = vld [vmem:[%s1109_s1 + $0x50] sm:$0xff]  }
  0x16   : > { %832 = vmatprep.subr.bf16.mxu0 %v926_v2 }
  0x17   : > { %847 = vmatpush3.bf16.msra.mxu1 %v905_v53 }
  0x18   : > { %848 = vmatprep.subr.bf16.mxu1 %v926_v2 }
  0x19   : > { %833 = vmatpush3.bf16.msra.mxu0 %v900_v8  ;;  %v907_v8 = vld [vmem:[%s1109_s1 + $0x58] sm:$0xff]  }
  0x1a   : > { %v292_v9 = vld [vmem:[#allocation2 + $0x1] sm:$0xff]  ;;  %v293_v10 = vld [vmem:[#allocation2 + $0x9] sm:$0xff]  ;;  %834 = vmatprep.subr.bf16.mxu0 %v926_v2 }
  0x1b   : > { %v294_v11 = vld [vmem:[#allocation2 + $0x2] sm:$0xff]  ;;  %v876_v12 = vpack.i.bf16 %v293_v10, %v292_v9  ;;  %v295_v13 = vld [vmem:[#allocation2 + $0xa] sm:$0xff]  ;;  %849 = vmatpush3.bf16.msra.mxu1 %v906_v7 }
  0x1c   : > { %v881_v14 = vpack.i.bf16 %v295_v13, %v294_v11  ;;  %v290_v19 = vld [vmem:[#allocation2] sm:$0xff]  ;;  %v291_v20 = vld [vmem:[#allocation2 + $0x8] sm:$0xff]  ;;  %850 = vmatprep.subr.bf16.mxu1 %v926_v2 }
  0x1d   : > { %877 = vrot.lane.b32.xlu0 %v876_v12, %s928_s18  ;;  %835 = vmatpush3.bf16.msra.mxu0 %v901_v15 }
  0x1e   : > { %856 = vmatprep.subr.bf16.mxu0 %v926_v2 }
  0x1f   : > { %851 = vmatpush3.bf16.msra.mxu1 %v907_v8 }
  0x21   : > { %882 = vrot.lane.b32.xlu0 %v881_v14, %s929_s21 }
  0x8f   : > { %v878_v16 = vpop.permute.xlu0 %877 }
  0x90   : > { %v880_v17 = vunpack.i.h.bf16 %v878_v16  ;;  %v879_v18 = vunpack.i.l.bf16 %v878_v16 }
  0x92   : > { %v312_v24 = vsel %vm287_vm1, %v290_v19, %v879_v18  ;;  %v313_v25 = vsel %vm287_vm1, %v291_v20, %v880_v17 }
  0x93   : > { %v883_v21 = vpop.permute.xlu0 %882 }
  0x94   : > { %v885_v22 = vunpack.i.h.bf16 %v883_v21  ;;  %v884_v23 = vunpack.i.l.bf16 %v883_v21 }
  0x96   : > { %v315_v26 = vsel %vm314_vm3, %v312_v24, %v884_v23  ;;  %v316_v27 = vsel %vm314_vm3, %v313_v25, %v885_v22 }
  0x97   : > { %v317_v28 = vpack.c.bf16 %v316_v27, %v315_v26 }
  0x99   : > { %837 = vmatmul.mubr.msk.bf16.vlgmr.msra.gmra.mrb[0].mxu0 %vm371_vm4, %v317_v28  ;;  %v789_v28 = vld [vmem:[%s1110_s2 + $0x1] ss:$0 sm:$0xff] }
  0x9a   : > { %860 = vmatprep.mubr.msk.bf16.mxu0 %vm927_vm2, %v926_v2 }
 0x16c   : > { %v409_v30 = vpop.f32.mrb[0].mxu0 }
 0x16d   : > { %v410_v31 = vadd.f32 %v767_v29, %v409_v30  ;;  %v838_v32 = vpop.f32.mrb[1].mxu0 }
 0x16e   : > { %v412_v33 = vpop.f32.mrb[2].mxu0 }
 0x16f   : > { %v416_v34 = vmax.f32 %v410_v31, 0.0  ;;  %v413_v35 = vadd.f32 %v767_v29, %v412_v33  ;;  %v839_v36 = vpop.f32.mrb[3].mxu0 }
 0x171   : > { %v417_v37 = vmax.f32 %v413_v35, 0.0  ;;  %v418_v38 = vsel %vm287_vm1, %v416_v34, 0.0 }
 0x172   : > { %419 = vadd.xlane.f32.xlu1 %v418_v38 }
 0x173   : > { %v421_v39 = vsel %vm287_vm1, %v417_v37, 0.0 }
 0x176   : > { %422 = vadd.xlane.f32.xlu1 %v421_v39 }
 0x1ff   : > { %v420_v40 = vpop.xlane.xlu1 %419 }
 0x200   : > { %v425_v41 = vmul.f32 0.03125, %v420_v40 }
 0x202   : > { %v427_v42 = vsub.f32 %v416_v34, %v425_v41 }
 0x203   : > { %v423_v43 = vpop.xlane.xlu1 %422 }
 0x204   : > { %v426_v44 = vmul.f32 0.03125, %v423_v43  ;;  %v429_v45 = vmul.f32 %v427_v42, %v427_v42 }
 0x206   : > { %v428_v46 = vsub.f32 %v417_v37, %v426_v44  ;;  %v431_v47 = vsel %vm287_vm1, %v429_v45, 0.0 }
 0x207   : > { %432 = vadd.xlane.f32.xlu0 %v431_v47 }
 0x208   : > { %v430_v48 = vmul.f32 %v428_v46, %v428_v46 }
 0x20a   : > { %v434_v49 = vsel %vm287_vm1, %v430_v48, 0.0 }
 0x20b   : > { %435 = vadd.xlane.f32.xlu1 %v434_v49  ;;  %v908_v49 = vld [vmem:[%s1113_s5] sm:$0xff]  }
 0x20c   : > { %857 = vmatpush3.bf16.msra.mxu0 %v908_v49 }
 0x20d   : > { %858 = vmatprep.subr.bf16.mxu0 %v926_v2  ;;  %v798_v2 = vld [vmem:[%s1112_s4 + $0x1] ss:$0 sm:$0xff] }
 0x210   : > { %859 = vmatpush3.bf16.msra.mxu0 %v909_v50 }
 0x294   : > { %v433_v54 = vpop.xlane.xlu0 %432 }
 0x295   : > { %v437_v55 = vmul.f32 0.03125, %v433_v54 }
 0x297   : > { %v439_v56 = vadd.f32 1e-05, %v437_v55 }
 0x298   : > { %v436_v57 = vpop.xlane.xlu1 %435 }
 0x299   : > { %910 = vrsqrt.f32 %v439_v56  ;;  %v438_v58 = vmul.f32 0.03125, %v436_v57 }
 0x29b   : > { %v440_v59 = vadd.f32 1e-05, %v438_v58  ;;  %v797_v58 = vld [vmem:[%s1111_s3 + $0x1] ss:$0 sm:$0xff] }
 0x29d   : > { %912 = vrsqrt.f32 %v440_v59 }
 0x2a3   : > { %v911_v60 = vpop.eup %910 }
 0x2a4   : > { %v443_v62 = vmul.f32 %v911_v60, %v427_v42 }
 0x2a6   : > { %v450_v0 = vmul.f32 %v775_v61, %v443_v62 }
 0x2a7   : > { %v913_v1 = vpop.eup %912 }
 0x2a8   : > { %v457_v3 = vadd.f32 %v776_v63, %v450_v0  ;;  %v444_v4 = vmul.f32 %v913_v1, %v428_v46 }
 0x2aa   : > { %459 = vst.msk [vmem:[#allocation2 + $0x1] sm:$0xff] %vm287_vm1, %v457_v3  ;;  %v451_v5 = vmul.f32 %v775_v61, %v444_v4 }
 0x2ac   : > { %v458_v6 = vadd.f32 %v776_v63, %v451_v5 }
 0x2ae   : > { %460 = vst.msk [vmem:[#allocation2 + $0x9] sm:$0xff] %vm287_vm1, %v458_v6  ;;  %v799_v6 = vld [vmem:[#allocation3] ss:$0 sm:$0xff] }
 0x2b1   : > { %v463_v9 = vld [vmem:[#allocation2 + $0x1] sm:$0xff] }
 0x2b2   : > { %v461_v19 = vld [vmem:[#allocation2] sm:$0xff] }
 0x2b5   : > { %v464_v10 = vld [vmem:[#allocation2 + $0x9] sm:$0xff] }
 0x2b6   : > { %v886_v11 = vpack.i.bf16 %v464_v10, %v463_v9  ;;  %v465_v12 = vld [vmem:[#allocation2 + $0x2] sm:$0xff]  ;;  %v466_v13 = vld [vmem:[#allocation2 + $0xa] sm:$0xff] }
 0x2b7   : > { %v891_v14 = vpack.i.bf16 %v466_v13, %v465_v12  ;;  %v462_v20 = vld [vmem:[#allocation2 + $0x8] sm:$0xff] }
 0x2b8   : > { %887 = vrot.lane.b32.xlu1 %v886_v11, %s928_s18 }
 0x2bc   : > { %892 = vrot.lane.b32.xlu1 %v891_v14, %s929_s21 }
 0x32a   : > { %v888_v15 = vpop.permute.xlu1 %887 }
 0x32b   : > { %v890_v16 = vunpack.i.h.bf16 %v888_v15  ;;  %v889_v17 = vunpack.i.l.bf16 %v888_v15 }
 0x32d   : > { %v483_v23 = vsel %vm287_vm1, %v461_v19, %v889_v17  ;;  %v484_v24 = vsel %vm287_vm1, %v462_v20, %v890_v16 }
 0x32e   : > { %v893_v18 = vpop.permute.xlu1 %892 }
 0x32f   : > { %v895_v21 = vunpack.i.h.bf16 %v893_v18  ;;  %v894_v22 = vunpack.i.l.bf16 %v893_v18 }
 0x331   : > { %v485_v25 = vsel %vm314_vm3, %v483_v23, %v894_v22  ;;  %v486_v26 = vsel %vm314_vm3, %v484_v24, %v895_v21 }
 0x332   : > { %v487_v27 = vpack.c.bf16 %v486_v26, %v485_v25 }
 0x334   : > { %853 = vmatmul.mubr.msk.bf16.vlgmr.msra.gmra.mrb[0].mxu1 %vm371_vm4, %v487_v27 }
 0x407   : > { %v579_v29 = vpop.f32.mrb[0].mxu1 }
 0x408   : > { %v580_v30 = vadd.f32 %v789_v28, %v579_v29  ;;  %v854_v31 = vpop.f32.mrb[1].mxu1 }
 0x409   : > { %v582_v32 = vpop.f32.mrb[2].mxu1 }
 0x40a   : > { %v586_v33 = vmax.f32 %v580_v30, 0.0  ;;  %v583_v34 = vadd.f32 %v789_v28, %v582_v32  ;;  %v855_v35 = vpop.f32.mrb[3].mxu1 }
 0x40c   : > { %v587_v36 = vmax.f32 %v583_v34, 0.0  ;;  %v588_v37 = vsel %vm287_vm1, %v586_v33, 0.0 }
 0x40d   : > { %589 = vadd.xlane.f32.xlu1 %v588_v37 }
 0x40e   : > { %v591_v38 = vsel %vm287_vm1, %v587_v36, 0.0 }
 0x40f   : > { %592 = vadd.xlane.f32.xlu0 %v591_v38 }
 0x49a   : > { %v590_v39 = vpop.xlane.xlu1 %589 }
 0x49b   : > { %v594_v40 = vmul.f32 0.03125, %v590_v39 }
 0x49c   : > { %v593_v41 = vpop.xlane.xlu0 %592 }
 0x49d   : > { %v596_v42 = vsub.f32 %v586_v33, %v594_v40  ;;  %v595_v43 = vmul.f32 0.03125, %v593_v41 }
 0x49f   : > { %v597_v44 = vsub.f32 %v587_v36, %v595_v43  ;;  %v598_v45 = vmul.f32 %v596_v42, %v596_v42 }
 0x4a1   : > { %v600_v46 = vsel %vm287_vm1, %v598_v45, 0.0  ;;  %v599_v47 = vmul.f32 %v597_v44, %v597_v44 }
 0x4a2   : > { %601 = vadd.xlane.f32.xlu0 %v600_v46 }
 0x4a3   : > { %v603_v48 = vsel %vm287_vm1, %v599_v47, 0.0 }
 0x4a6   : > { %604 = vadd.xlane.f32.xlu0 %v603_v48 }
 0x52f   : > { %v602_v51 = vpop.xlane.xlu0 %601 }
 0x530   : > { %v606_v52 = vmul.f32 0.03125, %v602_v51 }
 0x532   : > { %v608_v53 = vadd.f32 1e-05, %v606_v52 }
 0x533   : > { %v605_v54 = vpop.xlane.xlu0 %604 }
 0x534   : > { %914 = vrsqrt.f32 %v608_v53  ;;  %v607_v55 = vmul.f32 0.03125, %v605_v54 }
 0x536   : > { %v609_v56 = vadd.f32 1e-05, %v607_v55 }
 0x538   : > { %916 = vrsqrt.f32 %v609_v56 }
 0x53e   : > { %v915_v57 = vpop.eup %914 }
 0x53f   : > { %v612_v59 = vmul.f32 %v915_v57, %v596_v42 }
 0x541   : > { %v619_v60 = vmul.f32 %v797_v58, %v612_v59 }
 0x542   : > { %v917_v61 = vpop.eup %916 }
 0x543   : > { %v626_v62 = vadd.f32 %v798_v2, %v619_v60  ;;  %v613_v63 = vmul.f32 %v917_v61, %v597_v44 }
 0x545   : > { %628 = vst.msk [vmem:[#allocation2 + $0x1] sm:$0xff] %vm287_vm1, %v626_v62  ;;  %v620_v0 = vmul.f32 %v797_v58, %v613_v63 }
 0x547   : > { %v627_v1 = vadd.f32 %v798_v2, %v620_v0 }
 0x549   : > { %629 = vst.msk [vmem:[#allocation2 + $0x9] sm:$0xff] %vm287_vm1, %v627_v1 }
 0x54c   : > { %v630_v3 = vld [vmem:[#allocation2 + $0x1] sm:$0xff] }
 0x550   : > { %v631_v4 = vld [vmem:[#allocation2 + $0x9] sm:$0xff] }
 0x551   : > { %v632_v5 = vpack.c.bf16 %v631_v4, %v630_v3 }
 0x553   : > { %861 = vmatmul.mubr.msk.bf16.vlgmr.msra.gmra.mrb[4].mxu0 %vm287_vm1, %v632_v5 }
 0x626   : > { %v693_v7 = vpop.f32.mrb[4].mxu0 }
 0x627   : > { %v694_v8 = vadd.f32 %v799_v6, %v693_v7  ;;  %v862_v9 = vpop.f32.mrb[5].mxu0 }
 0x628   : > { %v696_v10 = vpop.f32.mrb[6].mxu0 }
 0x629   : > { %701 = vst.msk [vmem:[%s280_s10] sm:$0xff] %vm700_vm5, %v694_v8  ;;  %v697_v11 = vadd.f32 %v799_v6, %v696_v10  ;;  %v863_v12 = vpop.f32.mrb[7].mxu0 }
 0x62b   : > { %702 = vst.msk [vmem:[%s280_s10 + $0x8] sm:$0xff] %vm700_vm5, %v697_v11 }
 0x62c PF: > { %s19_s26 = sadd.s32 1, %s924_s26  }
 0x62d   : > { %p16_p4 = scmp.ge.s32.totalorder %s19_s26, 4  }
 0x62f   :  { %18 = sbr.rel (!%p16_p4) target bundleno = 3 (0x3), region = 79 }

</bundles_post_ra>
